<compile_context>
chip_gen: v6e
topology: v6e:2x2x1
jax: 0.10.0
libtpu: 0.0.40
codegen_flags: <defaults>
</compile_context>

<pallas_src>
import functools

import jax
import jax.numpy as jnp
import numpy as np
from jax import lax
from jax.experimental import pallas as pl
from jax.experimental.pallas import tpu as pltpu


def bottleneck_kernel(x_ref, mask_ref, a1_ref, c1_ref, a2_ref, c2_ref,
                      a3_ref, c3_ref, o_ref, patches_ref, *, W):
    # x_ref block: (Cin, L_tile) — channels on sublanes, fused batch*spatial
    # on lanes.  mask_ref: (9, 1, L_tile) f32 constant validity masks.
    x = x_ref[...]                                      # (Cin, Lt) f32
    Pp = a1_ref.shape[0]
    Lt = x.shape[1]

    # ---- conv1 (1x1, BN scale folded into a1) + bias + relu ----
    h1 = jnp.dot(a1_ref[...], x, preferred_element_type=jnp.float32)
    h1 = jnp.maximum(h1 + c1_ref[...], 0.0)             # (Pp, Lt) f32

    # ---- conv2 (3x3, stride 1, pad 1) as one im2col matmul ----
    # 9 lane-rolled copies, each multiplied by its precomputed per-image
    # boundary mask and written straight into the bf16 patches scratch.
    k = 0
    for dy in (-1, 0, 1):
        for dx in (-1, 0, 1):
            off = dy * W + dx
            shifted = h1 if off == 0 else pltpu.roll(h1, (-off) % Lt, axis=1)
            piece = shifted * mask_ref[k]                # f32 vmul (mask 0/1)
            patches_ref[pl.ds(k * Pp, Pp), :] = piece.astype(patches_ref.dtype)
            k += 1
    h2 = jnp.dot(a2_ref[...], patches_ref[...],          # bf16 x bf16 -> f32
                 preferred_element_type=jnp.float32)
    h2 = jnp.maximum(h2 + c2_ref[...], 0.0)              # (Pp, Lt) f32

    # ---- conv3 (1x1, BN folded) + bias + residual + relu ----
    h3 = jnp.dot(a3_ref[...], h2, preferred_element_type=jnp.float32)
    o_ref[...] = jnp.maximum(h3 + c3_ref[...] + x, 0.0)  # lane-dense store


def prepare_params(w1, s1, b1, w2, s2, b2, w3, s3, b3):
    """Fold BN scales into the conv weights, transpose them for the
    (C, lanes) kernel layout and pad the bottleneck width P up to a multiple
    of 16 (one bf16 sublane tile) so im2col pieces stay tile aligned.
    conv2's weight is cast to bf16 (MXU operand); padded channels are zero.

    Raw layouts: w1 (Cin, P), w2 (3, 3, P, P) HWIO, w3 (P, Cout); s*/b* (C,).
    """
    Cin, P = w1.shape
    Cout = w3.shape[1]
    Pp = ((P + 15) // 16) * 16

    a1 = jnp.zeros((Pp, Cin), jnp.float32).at[:P].set(w1.T * s1[:, None])
    c1 = jnp.zeros((Pp, 1), jnp.float32).at[:P, 0].set(b1)

    w2p = jnp.zeros((3, 3, Pp, Pp), jnp.float32).at[:, :, :P, :P].set(w2)
    s2p = jnp.zeros((Pp,), jnp.float32).at[:P].set(s2)
    a2 = (w2p.reshape(9 * Pp, Pp) * s2p[None, :]).T       # (Pp, 9*Pp)
    a2 = a2.astype(jnp.bfloat16)                           # MXU operand only
    c2 = jnp.zeros((Pp, 1), jnp.float32).at[:P, 0].set(b2)

    a3 = jnp.zeros((Cout, Pp), jnp.float32).at[:, :P].set(w3.T * s3[:, None])
    c3 = b3.reshape(Cout, 1).astype(jnp.float32)
    return (a1, c1, a2, c2, a3, c3)


def _make_masks(H, W, images_per_tile):
    """(9, 1, images_per_tile*H*W) f32 validity masks for the 9 (dy,dx)
    offsets, using per-image coordinates so rolled pixels never leak across
    image boundaries when the batch is fused into the lane axis."""
    L = H * W
    y = np.arange(L) // W
    xc = np.arange(L) % W
    ms = []
    for dy in (-1, 0, 1):
        for dx in (-1, 0, 1):
            valid = ((y + dy >= 0) & (y + dy < H) &
                     (xc + dx >= 0) & (xc + dx < W))
            ms.append(valid.astype(np.float32))
    m = np.stack(ms, axis=0).reshape(9, 1, L)
    m = np.tile(m, (1, 1, images_per_tile))
    return jnp.asarray(m)


def _tensorcores_per_chip():
    """v7x has 2 TensorCores per chip; v5e/v6e have 1.  Safe fallback = 1."""
    try:
        kind = jax.devices()[0].device_kind.lower()
    except Exception:
        return 1
    return 2 if ("v7" in kind or "7x" in kind) else 1


def bottleneck_forward(x_nchw, params):
    """x_nchw: (N, C, H, W) float32 in PyTorch layout; returns same layout."""
    (a1, c1, a2, c2, a3, c3) = params
    N, Cin, H, W = x_nchw.shape
    Cout = a3.shape[0]
    Pp = a1.shape[0]
    assert Cin == Cout, "identity residual requires inplanes == planes * 4"
    L_img = H * W

    # Single invocation on single-TC chips; split into per-core lane tiles on
    # v7x so both TensorCores stay busy.
    n_cores = _tensorcores_per_chip()
    num_tiles = n_cores if (N % n_cores == 0) else 1
    if num_tiles > 1 and ((N // num_tiles) * L_img) % 128 != 0:
        num_tiles = 1
    images_per_tile = N // num_tiles
    L_tile = images_per_tile * L_img

    # NCHW -> (Cin, N*H*W): each image occupies a consecutive L_img-lane slab.
    x = jnp.transpose(x_nchw.reshape(N, Cin, L_img), (1, 0, 2)
                      ).reshape(Cin, N * L_img)
    masks = _make_masks(H, W, images_per_tile)

    out = pl.pallas_call(
        functools.partial(bottleneck_kernel, W=W),
        out_shape=jax.ShapeDtypeStruct((Cout, N * L_img), jnp.float32),
        grid=(num_tiles,),
        in_specs=[
            pl.BlockSpec((Cin, L_tile), lambda t: (0, t)),
            pl.BlockSpec(masks.shape, lambda t: (0, 0, 0)),
            pl.BlockSpec(a1.shape, lambda t: (0, 0)),
            pl.BlockSpec(c1.shape, lambda t: (0, 0)),
            pl.BlockSpec(a2.shape, lambda t: (0, 0)),
            pl.BlockSpec(c2.shape, lambda t: (0, 0)),
            pl.BlockSpec(a3.shape, lambda t: (0, 0)),
            pl.BlockSpec(c3.shape, lambda t: (0, 0)),
        ],
        out_specs=pl.BlockSpec((Cout, L_tile), lambda t: (0, t)),
        scratch_shapes=[pltpu.VMEM((9 * Pp, L_tile), jnp.bfloat16)],
        compiler_params=pltpu.CompilerParams(
            dimension_semantics=("parallel",)),
    )(x, masks, a1, c1, a2, c2, a3, c3)

    return jnp.transpose(out.reshape(Cout, N, L_img), (1, 0, 2)
                         ).reshape(N, Cout, H, W)


def reference_nchw(x_nchw, raw_params):
    """Pure-JAX reference via lax.conv_general_dilated (independent code path)."""
    (w1, s1, b1, w2, s2, b2, w3, s3, b3) = raw_params
    x = jnp.transpose(x_nchw, (0, 2, 3, 1))                    # NHWC
    dn = ('NHWC', 'HWIO', 'NHWC')
    h = lax.conv_general_dilated(x, w1[None, None], (1, 1), 'VALID',
                                 dimension_numbers=dn)
    h = jnp.maximum(h * s1 + b1, 0.0)
    h = lax.conv_general_dilated(h, w2, (1, 1), 'SAME', dimension_numbers=dn)
    h = jnp.maximum(h * s2 + b2, 0.0)
    h = lax.conv_general_dilated(h, w3[None, None], (1, 1), 'VALID',
                                 dimension_numbers=dn)
    h = h * s3 + b3
    h = jnp.maximum(h + x, 0.0)
    return jnp.transpose(h, (0, 3, 1, 2))                      # back to NCHW


if __name__ == "__main__":
    key = jax.random.PRNGKey(0)
    keys = jax.random.split(key, 16)

    # Module config: Bottleneck(inplanes=16, planes=4), expansion 4,
    # stride=1, downsample=None  (inplanes == planes * 4 so residual adds).
    planes = 4
    inplanes = planes * 4            # 16
    N, H, W = 2, 16, 16

    def bn_fold(kg, kb, km, kv, c):
        gamma = 1.0 + 0.1 * jax.random.normal(kg, (c,), jnp.float32)
        beta = 0.1 * jax.random.normal(kb, (c,), jnp.float32)
        mean = 0.1 * jax.random.normal(km, (c,), jnp.float32)
        var = jax.random.uniform(kv, (c,), jnp.float32, minval=0.5, maxval=1.5)
        scale = gamma / jnp.sqrt(var + 1e-5)
        bias = beta - mean * scale
        return scale, bias

    x_nchw = jax.random.normal(keys[0], (N, inplanes, H, W), jnp.float32)

    w1 = 0.1 * jax.random.normal(keys[1], (inplanes, planes), jnp.float32)       # 1x1
    s1, b1 = bn_fold(keys[2], keys[3], keys[4], keys[5], planes)
    w2 = 0.1 * jax.random.normal(keys[6], (3, 3, planes, planes), jnp.float32)   # 3x3 HWIO
    s2, b2 = bn_fold(keys[7], keys[8], keys[9], keys[10], planes)
    w3 = 0.1 * jax.random.normal(keys[11], (planes, planes * 4), jnp.float32)    # 1x1
    s3, b3 = bn_fold(keys[12], keys[13], keys[14], keys[15], planes * 4)
    raw_params = (w1, s1, b1, w2, s2, b2, w3, s3, b3)

    kernel_params = prepare_params(*raw_params)
    out_nchw = bottleneck_forward(x_nchw, kernel_params)
    jax.block_until_ready(out_nchw)

    ref_nchw = reference_nchw(x_nchw, raw_params)
    # conv2 operands are bf16 on the MXU -> loosen tolerance vs f32 reference.
    np.testing.assert_allclose(np.asarray(out_nchw), np.asarray(ref_nchw),
                               rtol=2e-2, atol=2e-2)
    print("KERNEL_OK")
</pallas_src>

<mosaic_0001>
module attributes {stable_mosaic.version = 11 : i64} {
  func.func @bottleneck_kernel(%arg0: i32, %arg1: memref<16x512xf32, #tpu.memory_space<vmem>>, %arg2: memref<9x1x512xf32, #tpu.memory_space<vmem>>, %arg3: memref<16x16xf32, #tpu.memory_space<vmem>>, %arg4: memref<16x1xf32, #tpu.memory_space<vmem>>, %arg5: memref<16x144xbf16, #tpu.memory_space<vmem>>, %arg6: memref<16x1xf32, #tpu.memory_space<vmem>>, %arg7: memref<16x16xf32, #tpu.memory_space<vmem>>, %arg8: memref<16x1xf32, #tpu.memory_space<vmem>>, %arg9: memref<16x512xf32, #tpu.memory_space<vmem>>, %arg10: memref<144x512xbf16, #tpu.memory_space<vmem>>) attributes {dimension_semantics = [#tpu.dimension_semantics<parallel>], iteration_bounds = array<i64: 1>, scalar_prefetch = 0 : i64, scratch_operands = 1 : i64, tpu.core_type = #tpu.core_type<tc>, window_params = [{transform_indices = @transform_0, window_bounds = array<i64: 16, 512>}, {pipeline_mode = #tpu.pipeline_mode<synchronous>, transform_indices = @transform_1, window_bounds = array<i64: 9, 1, 512>}, {pipeline_mode = #tpu.pipeline_mode<synchronous>, transform_indices = @transform_2, window_bounds = array<i64: 16, 16>}, {pipeline_mode = #tpu.pipeline_mode<synchronous>, transform_indices = @transform_3, window_bounds = array<i64: 16, 1>}, {pipeline_mode = #tpu.pipeline_mode<synchronous>, transform_indices = @transform_4, window_bounds = array<i64: 16, 144>}, {pipeline_mode = #tpu.pipeline_mode<synchronous>, transform_indices = @transform_5, window_bounds = array<i64: 16, 1>}, {pipeline_mode = #tpu.pipeline_mode<synchronous>, transform_indices = @transform_6, window_bounds = array<i64: 16, 16>}, {pipeline_mode = #tpu.pipeline_mode<synchronous>, transform_indices = @transform_7, window_bounds = array<i64: 16, 1>}, {transform_indices = @transform_8, window_bounds = array<i64: 16, 512>}]} {
    %c0 = arith.constant 0 : index
    %c0_0 = arith.constant 0 : index
    %0 = vector.load %arg1[%c0, %c0_0] : memref<16x512xf32, #tpu.memory_space<vmem>>, vector<16x512xf32>
    %c0_1 = arith.constant 0 : index
    %c0_2 = arith.constant 0 : index
    %1 = vector.load %arg3[%c0_1, %c0_2] : memref<16x16xf32, #tpu.memory_space<vmem>>, vector<16x16xf32>
    %cst = arith.constant dense<0.000000e+00> : vector<16x512xf32>
    %2 = tpu.matmul %1, %0, %cst {dimension_numbers = #tpu.dot_dimension_numbers<[1], [0], [0], [1], [0, 0, 1, 1], [], []>} : vector<16x16xf32>, vector<16x512xf32>, vector<16x512xf32> -> vector<16x512xf32>
    %c0_3 = arith.constant 0 : index
    %c0_4 = arith.constant 0 : index
    %3 = vector.load %arg4[%c0_3, %c0_4] : memref<16x1xf32, #tpu.memory_space<vmem>>, vector<16x1xf32>
    %4 = vector.broadcast %3 : vector<16x1xf32> to vector<16x512xf32>
    %5 = arith.addf %2, %4 : vector<16x512xf32>
    %cst_5 = arith.constant 0.000000e+00 : f32
    %6 = vector.broadcast %cst_5 : f32 to vector<16x512xf32>
    %7 = arith.maximumf %5, %6 : vector<16x512xf32>
    %c17_i32 = arith.constant 17 : i32
    %8 = tpu.dynamic_rotate %7 by %c17_i32 dim 1 : vector<16x512xf32>, i32 -> vector<16x512xf32>
    %c0_6 = arith.constant 0 : index
    %c0_7 = arith.constant 0 : index
    %c0_8 = arith.constant 0 : index
    %9 = vector.load %arg2[%c0_6, %c0_7, %c0_8] : memref<9x1x512xf32, #tpu.memory_space<vmem>>, vector<1x1x512xf32>
    %10 = vector.shape_cast %9 : vector<1x1x512xf32> to vector<1x512xf32>
    %11 = vector.broadcast %10 : vector<1x512xf32> to vector<16x512xf32>
    %12 = arith.mulf %8, %11 : vector<16x512xf32>
    %13 = arith.truncf %12 : vector<16x512xf32> to vector<16x512xbf16>
    %c0_9 = arith.constant 0 : index
    %c0_10 = arith.constant 0 : index
    %14 = vector.load %arg10[%c0_9, %c0_10] : memref<144x512xbf16, #tpu.memory_space<vmem>>, vector<16x512xbf16>
    tpu.vector_store %arg10[%c0_9, %c0_10], %13 {strides = array<i32>} : memref<144x512xbf16, #tpu.memory_space<vmem>>, vector<16x512xbf16>,
    %c16_i32 = arith.constant 16 : i32
    %15 = tpu.dynamic_rotate %7 by %c16_i32 dim 1 : vector<16x512xf32>, i32 -> vector<16x512xf32>
    %c1 = arith.constant 1 : index
    %c0_11 = arith.constant 0 : index
    %c0_12 = arith.constant 0 : index
    %16 = vector.load %arg2[%c1, %c0_11, %c0_12] : memref<9x1x512xf32, #tpu.memory_space<vmem>>, vector<1x1x512xf32>
    %17 = vector.shape_cast %16 : vector<1x1x512xf32> to vector<1x512xf32>
    %18 = vector.broadcast %17 : vector<1x512xf32> to vector<16x512xf32>
    %19 = arith.mulf %15, %18 : vector<16x512xf32>
    %20 = arith.truncf %19 : vector<16x512xf32> to vector<16x512xbf16>
    %c16 = arith.constant 16 : index
    %c0_13 = arith.constant 0 : index
    %21 = vector.load %arg10[%c16, %c0_13] : memref<144x512xbf16, #tpu.memory_space<vmem>>, vector<16x512xbf16>
    tpu.vector_store %arg10[%c16, %c0_13], %20 {strides = array<i32>} : memref<144x512xbf16, #tpu.memory_space<vmem>>, vector<16x512xbf16>,
    %c15_i32 = arith.constant 15 : i32
    %22 = tpu.dynamic_rotate %7 by %c15_i32 dim 1 : vector<16x512xf32>, i32 -> vector<16x512xf32>
    %c2 = arith.constant 2 : index
    %c0_14 = arith.constant 0 : index
    %c0_15 = arith.constant 0 : index
    %23 = vector.load %arg2[%c2, %c0_14, %c0_15] : memref<9x1x512xf32, #tpu.memory_space<vmem>>, vector<1x1x512xf32>
    %24 = vector.shape_cast %23 : vector<1x1x512xf32> to vector<1x512xf32>
    %25 = vector.broadcast %24 : vector<1x512xf32> to vector<16x512xf32>
    %26 = arith.mulf %22, %25 : vector<16x512xf32>
    %27 = arith.truncf %26 : vector<16x512xf32> to vector<16x512xbf16>
    %c32 = arith.constant 32 : index
    %c0_16 = arith.constant 0 : index
    %28 = vector.load %arg10[%c32, %c0_16] : memref<144x512xbf16, #tpu.memory_space<vmem>>, vector<16x512xbf16>
    tpu.vector_store %arg10[%c32, %c0_16], %27 {strides = array<i32>} : memref<144x512xbf16, #tpu.memory_space<vmem>>, vector<16x512xbf16>,
    %c1_i32 = arith.constant 1 : i32
    %29 = tpu.dynamic_rotate %7 by %c1_i32 dim 1 : vector<16x512xf32>, i32 -> vector<16x512xf32>
    %c3 = arith.constant 3 : index
    %c0_17 = arith.constant 0 : index
    %c0_18 = arith.constant 0 : index
    %30 = vector.load %arg2[%c3, %c0_17, %c0_18] : memref<9x1x512xf32, #tpu.memory_space<vmem>>, vector<1x1x512xf32>
    %31 = vector.shape_cast %30 : vector<1x1x512xf32> to vector<1x512xf32>
    %32 = vector.broadcast %31 : vector<1x512xf32> to vector<16x512xf32>
    %33 = arith.mulf %29, %32 : vector<16x512xf32>
    %34 = arith.truncf %33 : vector<16x512xf32> to vector<16x512xbf16>
    %c48 = arith.constant 48 : index
    %c0_19 = arith.constant 0 : index
    %35 = vector.load %arg10[%c48, %c0_19] : memref<144x512xbf16, #tpu.memory_space<vmem>>, vector<16x512xbf16>
    tpu.vector_store %arg10[%c48, %c0_19], %34 {strides = array<i32>} : memref<144x512xbf16, #tpu.memory_space<vmem>>, vector<16x512xbf16>,
    %c4 = arith.constant 4 : index
    %c0_20 = arith.constant 0 : index
    %c0_21 = arith.constant 0 : index
    %36 = vector.load %arg2[%c4, %c0_20, %c0_21] : memref<9x1x512xf32, #tpu.memory_space<vmem>>, vector<1x1x512xf32>
    %37 = vector.shape_cast %36 : vector<1x1x512xf32> to vector<1x512xf32>
    %38 = vector.broadcast %37 : vector<1x512xf32> to vector<16x512xf32>
    %39 = arith.mulf %7, %38 : vector<16x512xf32>
    %40 = arith.truncf %39 : vector<16x512xf32> to vector<16x512xbf16>
    %c64 = arith.constant 64 : index
    %c0_22 = arith.constant 0 : index
    %41 = vector.load %arg10[%c64, %c0_22] : memref<144x512xbf16, #tpu.memory_space<vmem>>, vector<16x512xbf16>
    tpu.vector_store %arg10[%c64, %c0_22], %40 {strides = array<i32>} : memref<144x512xbf16, #tpu.memory_space<vmem>>, vector<16x512xbf16>,
    %c511_i32 = arith.constant 511 : i32
    %42 = tpu.dynamic_rotate %7 by %c511_i32 dim 1 : vector<16x512xf32>, i32 -> vector<16x512xf32>
    %c5 = arith.constant 5 : index
    %c0_23 = arith.constant 0 : index
    %c0_24 = arith.constant 0 : index
    %43 = vector.load %arg2[%c5, %c0_23, %c0_24] : memref<9x1x512xf32, #tpu.memory_space<vmem>>, vector<1x1x512xf32>
    %44 = vector.shape_cast %43 : vector<1x1x512xf32> to vector<1x512xf32>
    %45 = vector.broadcast %44 : vector<1x512xf32> to vector<16x512xf32>
    %46 = arith.mulf %42, %45 : vector<16x512xf32>
    %47 = arith.truncf %46 : vector<16x512xf32> to vector<16x512xbf16>
    %c80 = arith.constant 80 : index
    %c0_25 = arith.constant 0 : index
    %48 = vector.load %arg10[%c80, %c0_25] : memref<144x512xbf16, #tpu.memory_space<vmem>>, vector<16x512xbf16>
    tpu.vector_store %arg10[%c80, %c0_25], %47 {strides = array<i32>} : memref<144x512xbf16, #tpu.memory_space<vmem>>, vector<16x512xbf16>,
    %c497_i32 = arith.constant 497 : i32
    %49 = tpu.dynamic_rotate %7 by %c497_i32 dim 1 : vector<16x512xf32>, i32 -> vector<16x512xf32>
    %c6 = arith.constant 6 : index
    %c0_26 = arith.constant 0 : index
    %c0_27 = arith.constant 0 : index
    %50 = vector.load %arg2[%c6, %c0_26, %c0_27] : memref<9x1x512xf32, #tpu.memory_space<vmem>>, vector<1x1x512xf32>
    %51 = vector.shape_cast %50 : vector<1x1x512xf32> to vector<1x512xf32>
    %52 = vector.broadcast %51 : vector<1x512xf32> to vector<16x512xf32>
    %53 = arith.mulf %49, %52 : vector<16x512xf32>
    %54 = arith.truncf %53 : vector<16x512xf32> to vector<16x512xbf16>
    %c96 = arith.constant 96 : index
    %c0_28 = arith.constant 0 : index
    %55 = vector.load %arg10[%c96, %c0_28] : memref<144x512xbf16, #tpu.memory_space<vmem>>, vector<16x512xbf16>
    tpu.vector_store %arg10[%c96, %c0_28], %54 {strides = array<i32>} : memref<144x512xbf16, #tpu.memory_space<vmem>>, vector<16x512xbf16>,
    %c496_i32 = arith.constant 496 : i32
    %56 = tpu.dynamic_rotate %7 by %c496_i32 dim 1 : vector<16x512xf32>, i32 -> vector<16x512xf32>
    %c7 = arith.constant 7 : index
    %c0_29 = arith.constant 0 : index
    %c0_30 = arith.constant 0 : index
    %57 = vector.load %arg2[%c7, %c0_29, %c0_30] : memref<9x1x512xf32, #tpu.memory_space<vmem>>, vector<1x1x512xf32>
    %58 = vector.shape_cast %57 : vector<1x1x512xf32> to vector<1x512xf32>
    %59 = vector.broadcast %58 : vector<1x512xf32> to vector<16x512xf32>
    %60 = arith.mulf %56, %59 : vector<16x512xf32>
    %61 = arith.truncf %60 : vector<16x512xf32> to vector<16x512xbf16>
    %c112 = arith.constant 112 : index
    %c0_31 = arith.constant 0 : index
    %62 = vector.load %arg10[%c112, %c0_31] : memref<144x512xbf16, #tpu.memory_space<vmem>>, vector<16x512xbf16>
    tpu.vector_store %arg10[%c112, %c0_31], %61 {strides = array<i32>} : memref<144x512xbf16, #tpu.memory_space<vmem>>, vector<16x512xbf16>,
    %c495_i32 = arith.constant 495 : i32
    %63 = tpu.dynamic_rotate %7 by %c495_i32 dim 1 : vector<16x512xf32>, i32 -> vector<16x512xf32>
    %c8 = arith.constant 8 : index
    %c0_32 = arith.constant 0 : index
    %c0_33 = arith.constant 0 : index
    %64 = vector.load %arg2[%c8, %c0_32, %c0_33] : memref<9x1x512xf32, #tpu.memory_space<vmem>>, vector<1x1x512xf32>
    %65 = vector.shape_cast %64 : vector<1x1x512xf32> to vector<1x512xf32>
    %66 = vector.broadcast %65 : vector<1x512xf32> to vector<16x512xf32>
    %67 = arith.mulf %63, %66 : vector<16x512xf32>
    %68 = arith.truncf %67 : vector<16x512xf32> to vector<16x512xbf16>
    %c128 = arith.constant 128 : index
    %c0_34 = arith.constant 0 : index
    %69 = vector.load %arg10[%c128, %c0_34] : memref<144x512xbf16, #tpu.memory_space<vmem>>, vector<16x512xbf16>
    tpu.vector_store %arg10[%c128, %c0_34], %68 {strides = array<i32>} : memref<144x512xbf16, #tpu.memory_space<vmem>>, vector<16x512xbf16>,
    %c0_35 = arith.constant 0 : index
    %c0_36 = arith.constant 0 : index
    %70 = vector.load %arg5[%c0_35, %c0_36] : memref<16x144xbf16, #tpu.memory_space<vmem>>, vector<16x144xbf16>
    %c0_37 = arith.constant 0 : index
    %c0_38 = arith.constant 0 : index
    %71 = vector.load %arg10[%c0_37, %c0_38] : memref<144x512xbf16, #tpu.memory_space<vmem>>, vector<144x512xbf16>
    %cst_39 = arith.constant dense<0.000000e+00> : vector<16x512xf32>
    %72 = tpu.matmul %70, %71, %cst_39 {dimension_numbers = #tpu.dot_dimension_numbers<[1], [0], [0], [1], [0, 0, 1, 1], [], []>} : vector<16x144xbf16>, vector<144x512xbf16>, vector<16x512xf32> -> vector<16x512xf32>
    %c0_40 = arith.constant 0 : index
    %c0_41 = arith.constant 0 : index
    %73 = vector.load %arg6[%c0_40, %c0_41] : memref<16x1xf32, #tpu.memory_space<vmem>>, vector<16x1xf32>
    %74 = vector.broadcast %73 : vector<16x1xf32> to vector<16x512xf32>
    %75 = arith.addf %72, %74 : vector<16x512xf32>
    %cst_42 = arith.constant 0.000000e+00 : f32
    %76 = vector.broadcast %cst_42 : f32 to vector<16x512xf32>
    %77 = arith.maximumf %75, %76 : vector<16x512xf32>
    %c0_43 = arith.constant 0 : index
    %c0_44 = arith.constant 0 : index
    %78 = vector.load %arg7[%c0_43, %c0_44] : memref<16x16xf32, #tpu.memory_space<vmem>>, vector<16x16xf32>
    %cst_45 = arith.constant dense<0.000000e+00> : vector<16x512xf32>
    %79 = tpu.matmul %78, %77, %cst_45 {dimension_numbers = #tpu.dot_dimension_numbers<[1], [0], [0], [1], [0, 0, 1, 1], [], []>} : vector<16x16xf32>, vector<16x512xf32>, vector<16x512xf32> -> vector<16x512xf32>
    %c0_46 = arith.constant 0 : index
    %c0_47 = arith.constant 0 : index
    %80 = vector.load %arg8[%c0_46, %c0_47] : memref<16x1xf32, #tpu.memory_space<vmem>>, vector<16x1xf32>
    %81 = vector.broadcast %80 : vector<16x1xf32> to vector<16x512xf32>
    %82 = arith.addf %79, %81 : vector<16x512xf32>
    %83 = arith.addf %82, %0 : vector<16x512xf32>
    %cst_48 = arith.constant 0.000000e+00 : f32
    %84 = vector.broadcast %cst_48 : f32 to vector<16x512xf32>
    %85 = arith.maximumf %83, %84 : vector<16x512xf32>
    %c0_49 = arith.constant 0 : index
    %c0_50 = arith.constant 0 : index
    %86 = vector.load %arg9[%c0_49, %c0_50] : memref<16x512xf32, #tpu.memory_space<vmem>>, vector<16x512xf32>
    tpu.vector_store %arg9[%c0_49, %c0_50], %85 {strides = array<i32>} : memref<16x512xf32, #tpu.memory_space<vmem>>, vector<16x512xf32>,
    return
  }
  func.func @transform_0(%arg0: i32) -> (i32, i32) {
    %c0_i32 = arith.constant 0 : i32
    %c0_i32_0 = arith.constant 0 : i32
    return %c0_i32, %arg0 : i32, i32
  }
  func.func @transform_1(%arg0: i32) -> (i32, i32, i32) {
    %c0_i32 = arith.constant 0 : i32
    %c0_i32_0 = arith.constant 0 : i32
    %c0_i32_1 = arith.constant 0 : i32
    %c0_i32_2 = arith.constant 0 : i32
    return %c0_i32, %c0_i32_0, %c0_i32_1 : i32, i32, i32
  }
  func.func @transform_2(%arg0: i32) -> (i32, i32) {
    %c0_i32 = arith.constant 0 : i32
    %c0_i32_0 = arith.constant 0 : i32
    %c0_i32_1 = arith.constant 0 : i32
    return %c0_i32, %c0_i32_0 : i32, i32
  }
  func.func @transform_3(%arg0: i32) -> (i32, i32) {
    %c0_i32 = arith.constant 0 : i32
    %c0_i32_0 = arith.constant 0 : i32
    %c0_i32_1 = arith.constant 0 : i32
    return %c0_i32, %c0_i32_0 : i32, i32
  }
  func.func @transform_4(%arg0: i32) -> (i32, i32) {
    %c0_i32 = arith.constant 0 : i32
    %c0_i32_0 = arith.constant 0 : i32
    %c0_i32_1 = arith.constant 0 : i32
    return %c0_i32, %c0_i32_0 : i32, i32
  }
  func.func @transform_5(%arg0: i32) -> (i32, i32) {
    %c0_i32 = arith.constant 0 : i32
    %c0_i32_0 = arith.constant 0 : i32
    %c0_i32_1 = arith.constant 0 : i32
    return %c0_i32, %c0_i32_0 : i32, i32
  }
  func.func @transform_6(%arg0: i32) -> (i32, i32) {
    %c0_i32 = arith.constant 0 : i32
    %c0_i32_0 = arith.constant 0 : i32
    %c0_i32_1 = arith.constant 0 : i32
    return %c0_i32, %c0_i32_0 : i32, i32
  }
  func.func @transform_7(%arg0: i32) -> (i32, i32) {
    %c0_i32 = arith.constant 0 : i32
    %c0_i32_0 = arith.constant 0 : i32
    %c0_i32_1 = arith.constant 0 : i32
    return %c0_i32, %c0_i32_0 : i32, i32
  }
  func.func @transform_8(%arg0: i32) -> (i32, i32) {
    %c0_i32 = arith.constant 0 : i32
    %c0_i32_0 = arith.constant 0 : i32
    return %c0_i32, %arg0 : i32, i32
  }
}

</mosaic_0001>

<bundles_post_ra>
// kernel: tpu_custom_call.1
= control target key start
LH: loop header
LB: loop body
LE: loop exit
PB: predicated region body
PF: predicated region fallthrough
CT: control target
= control target key end

     0   :  { %13 = vsyncpa [#allocation4], 0  ;;  %s2440_s0 = inlined_call_operand.hbm [shape: f32[16,512], index: 0, kind: input, shape index: {}]   ;;  %s2441_s1 = inlined_call_operand.vmem [shape: f32[9,1,512], index: 1, kind: input, shape index: {}]   ;;  %s2442_s2 = inlined_call_operand.vmem [shape: f32[16,16], index: 2, kind: input, shape index: {}]   ;;  %s2443_s3 = inlined_call_operand.vmem [shape: f32[16,1], index: 3, kind: input, shape index: {}]   ;;  %s2444_s4 = inlined_call_operand.hbm [shape: bf16[16,144], index: 4, kind: input, shape index: {}]   ;;  %s2445_s5 = inlined_call_operand.vmem [shape: f32[16,1], index: 5, kind: input, shape index: {}]   ;;  %s2446_s6 = inlined_call_operand.hbm [shape: f32[16,16], index: 6, kind: input, shape index: {}]   ;;  %s2447_s7 = inlined_call_operand.vmem [shape: f32[16,1], index: 7, kind: input, shape index: {}]   ;;  %s2448_s8 = inlined_call_operand.hbm [shape: f32[16,512], index: 8, kind: output, shape index: {}]  }
   0x1   :  { %14 = vsyncpa [#allocation7], 0 }
   0x2   :  { %15 = vsyncpa [#allocation5], 0  ;;  %s1828_s27 = smov [#allocation6]  }
   0x3   :  { %s39_s28 = sshll.u32 %s1828_s27, 4  ;;  %s40_s28 = int_to_ptr.vmem [resolvable:$true] %s39_s28 }
   0x4   :  { %s1750_s29 = scalar_lea.vmem %s40_s28, 256  ;;  %p1755_p1 = scmp.lt.s32.totalorder %s40_s28, %s40_s28 }
   0x5   :  { %p1751_p0 = scmp.ne.s32.totalorder %s40_s28, %s1750_s29  ;;  %p1756_p2 = scmp.lt.s32.totalorder %s1750_s29, %s1750_s29 }
   0x7   :  { %p1757_p3 = por %p1756_p2, %p1755_p1 }
   0x9   :  { %p1758_p4 = pnand %p1757_p3, %p1751_p0 }
   0xb   :  { %1761 = shalt.err (!%p1758_p4)
}
   0xc   :  { %s1829_s30 = smov 128   ;;  %s1830_s9 = smov 8  }
   0xd   :  { %45 = dma.hbm_to_vmem [thread:$0]  %s2444_s4, 256, %s40_s28, [#allocation7], %s1829_s30, %s1829_s30, %s1830_s9  }
   0xe   :  { %s1831_s12 = smov [#allocation3]  }
   0xf   :  { %s21_s13 = sshll.u32 %s1831_s12, 4  ;;  %s22_s13 = int_to_ptr.vmem [resolvable:$true] %s21_s13 }
  0x10   :  { %s1770_s14 = scalar_lea.vmem %s22_s13, 1024  ;;  %p1775_p6 = scmp.lt.s32.totalorder %s22_s13, %s22_s13 }
  0x11   :  { %p1771_p5 = scmp.ne.s32.totalorder %s22_s13, %s1770_s14  ;;  %p1776_p7 = scmp.lt.s32.totalorder %s1770_s14, %s1770_s14 }
  0x13   :  { %p1777_p8 = por %p1776_p7, %p1775_p6 }
  0x15   :  { %p1778_p9 = pnand %p1777_p8, %p1771_p5 }
  0x17   :  { %1781 = shalt.err (!%p1778_p9)
}
  0x18   :  { %s1832_s15 = smov 512   ;;  %s1833_s16 = smov 32  }
  0x19   :  { %27 = dma.hbm_to_vmem [thread:$0]  %s2440_s0, 1024, %s22_s13, [#allocation4], %s1832_s15, %s1832_s15, %s1833_s16  }
  0x1a   :  { %s1834_s4 = smov [#allocation8]  }
  0x1b   :  { %s53_s19 = sshll.u32 %s1834_s4, 4  ;;  %s54_s19 = int_to_ptr.vmem [resolvable:$true] %s53_s19 }
  0x1c   :  { %s1790_s20 = scalar_lea.vmem %s54_s19, 256  ;;  %p1795_p11 = scmp.lt.s32.totalorder %s54_s19, %s54_s19 }
  0x1d   :  { %p1791_p10 = scmp.ne.s32.totalorder %s54_s19, %s1790_s20  ;;  %p1796_p12 = scmp.lt.s32.totalorder %s1790_s20, %s1790_s20 }
  0x1f   :  { %p1797_p13 = por %p1796_p12, %p1795_p11 }
  0x21   :  { %p1798_p0 = pnand %p1797_p13, %p1791_p10 }
  0x23   :  { %1801 = shalt.err (!%p1798_p0)
}
  0x24   :  { %59 = dma.hbm_to_vmem [thread:$0]  %s2446_s6, 256, %s54_s19, [#allocation7], %s1829_s30, %s1829_s30, %s1830_s9  }
  0x25   :  { %1822 = dma.done.wait [#allocation4], 1024  }
  0x26   :  { %1823 = vsyncadd [#allocation4], 4294966272 }
  0x27   :  { %1824 = dma.done.wait [#allocation7], 512  }
  0x28   :  { %1825 = vsyncadd [#allocation7], 4294966784  ;;  %v2449_v0 = vmov 0.0   ;;  %v1836_v1 = vmov 0   ;;  %v77_v2 = vld [vmem:[#allocation3 + $0x28] sm:$0xff]  ;;  %v79_v3 = vld [vmem:[#allocation3 + $0x38] sm:$0xff]  ;;  %v279_v14 = vlaneseq }
  0x29   :  { %165 = vmatprep.mubr.f32.mxu0 %v2449_v0  ;;  %242 = vmatprep.mubr.f32.mxu1 %v2449_v0  ;;  %v76_v4 = vld [vmem:[#allocation3 + $0x20] sm:$0xff]  ;;  %v78_v5 = vld [vmem:[#allocation3 + $0x30] sm:$0xff]  ;;  %v73_v6 = vld [vmem:[#allocation3 + $0x8] sm:$0xff]  ;;  %vm94_vm0 = vcmask 130048   ;;  %s1837_s29 = smov 112   ;;  %s1838_s30 = smov 113  }
  0x2a   :  { %1729 = vset.pattern.permute.xlu0 %v1836_v1  ;;  %1730 = vset.pattern.permute.xlu1 %v1836_v1  ;;  %v75_v7 = vld [vmem:[#allocation3 + $0x18] sm:$0xff]  ;;  %v72_v8 = vld [vmem:[#allocation3] sm:$0xff]  ;;  %v74_v9 = vld [vmem:[#allocation3 + $0x10] sm:$0xff]  ;;  %v1924_v15 = vshrl.u32 %v279_v14, 7  ;;  %s1839_s9 = smov 127   ;;  %s1840_s10 = smov 1  }
  0x2b   :  { %129 = vmatprep.subr.mxu0 %v77_v2  ;;  %206 = vmatprep.subr.mxu1 %v79_v3  ;;  %v80_v10 = vld [vmem:[%s2442_s2] sm:$0xff]  ;;  %v81_v12 = vld [vmem:[%s2442_s2 + $0x8] sm:$0xff]  ;;  %v1939_v23 = vld [vmem:[%s2441_s1 + $0x10] sm:$0xf]  ;;  %s1841_s11 = smov 15   ;;  %s1842_s12 = smov 16  }
  0x2c   :  { %130 = vmatpush1.msra.mxu0 %v76_v4  ;;  %207 = vmatpush1.msra.mxu1 %v78_v5  ;;  %v82_v11 = vld [vmem:[%s2443_s3] sm:$0xff]  ;;  %v83_v13 = vld [vmem:[%s2443_s3 + $0x8] sm:$0xff]  ;;  %v1929_v19 = vsub.s32 0, %v1924_v15  ;;  %v1934_v22 = vsub.s32 2, %v1924_v15  ;;  %s1843_s13 = smov 17   ;;  %s1844_s14 = smov 111  }
  0x2d   :  { %131 = vmatprep.subr.mxu0 %v73_v6  ;;  %208 = vmatprep.subr.mxu1 %v75_v7  ;;  %v1733_v57 = vld [vmem:[#allocation6 + $0x4] ss:$8 sps:$4 sm:$0xff]  }
  0x2e   :  { %132 = vmatpush1.msra.mxu0 %v72_v8  ;;  %209 = vmatpush1.msra.mxu1 %v74_v9  ;;  %v606_v31 = vrot.slane %v1939_v23, %v1929_v19  ;;  %v614_v34 = vrot.slane %v1939_v23, %v1934_v22  ;;  %v1034_v58 = vld [vmem:[%s2445_s5 + $0x8] sm:$0xff]  ;;  %v1333_v61 = vld [vmem:[%s2447_s7] sm:$0xff] }
  0x2f   :  { %1547 = vmatmul.mubr.msk.f32.vlgmr.msra.gmra.mxu0 %vm94_vm0, %v80_v10  ;;  %1549 = vmatmul.mubr.msk.f32.vlgmr.msra.gmra.mxu1 %vm94_vm0, %v80_v10  ;;  %v1033_v1 = vld [vmem:[%s2445_s5] sm:$0xff]  ;;  %v1334_v4 = vld [vmem:[%s2447_s7 + $0x8] sm:$0xff] }
  0x30   :  { %171 = vmatprep.mubr.f32.mxu0 %v2449_v0  ;;  %248 = vmatprep.mubr.f32.mxu1 %v2449_v0 }
  0x31   :  { %86 = vperm.xlu0 %1729, %v82_v11  }
  0x33   :  { %1548 = vmatmul.mubr.msk.f32.gmra.mxu0 %vm94_vm0, %v81_v12  ;;  %1550 = vmatmul.mubr.msk.f32.gmra.mxu1 %vm94_vm0, %v81_v12 }
  0x34   :  { %1633 = vmatprep.mubr.msk.bf16.mxu0 %vm94_vm0, %v1733_v57  ;;  %1634 = vmatprep.mubr.msk.bf16.mxu1 %vm94_vm0, %v1733_v57 }
  0x35   :  { %91 = vperm.xlu0 %1729, %v83_v13  }
  0xac   :  { %v1926_v16 = vpop.permute.xlu0 %86 }
  0xb0   :  { %v1941_v26 = vpop.permute.xlu0 %91 }
  0xef   :  { %v167_v17 = vpop.f32.mrf.mxu0  ;;  %v244_v18 = vpop.f32.mrf.mxu1 }
  0xf0   :  { %v168_v20 = vadd.f32 %v167_v17, %v1926_v16  ;;  %v245_v21 = vadd.f32 %v244_v18, %v1926_v16 }
  0xf1   :  { %v169_v24 = vpop.f32.mrf.mxu0  ;;  %v246_v25 = vpop.f32.mrf.mxu1 }
  0xf2   :  { %v255_v27 = vmax.f32 %v168_v20, 0.0  ;;  %v257_v28 = vmax.f32 %v245_v21, 0.0  ;;  %v170_v43 = vadd.f32 %v169_v24, %v1926_v16  ;;  %v247_v45 = vadd.f32 %v246_v25, %v1926_v16 }
  0xf3   :  { %v173_v29 = vpop.f32.mrf.mxu0  ;;  %v250_v30 = vpop.f32.mrf.mxu1 }
  0xf4   :  { %v174_v32 = vadd.f32 %v173_v29, %v1941_v26  ;;  %v251_v33 = vadd.f32 %v250_v30, %v1941_v26  ;;  %835 = vrot.lane.b32.xlu0 %v257_v28, %s1837_s29  ;;  %827 = vrot.lane.b32.xlu1 %v255_v27, %s1837_s29  ;;  %v1951_v37 = vmul.f32 %v606_v31, %v255_v27  ;;  %v1992_v44 = vmax.f32 %v170_v43, 0.0 }
  0xf5   :  { %v1957_v39 = vmul.f32 %v614_v34, %v257_v28  ;;  %v175_v46 = vpop.f32.mrf.mxu0  ;;  %v1998_v47 = vmax.f32 %v247_v45, 0.0  ;;  %v252_v49 = vpop.f32.mrf.mxu1  ;;  %v2144_v30 = vand.u32 127, %v279_v14 }
  0xf6   :  { %v259_v35 = vmax.f32 %v174_v32, 0.0  ;;  %v261_v36 = vmax.f32 %v251_v33, 0.0  ;;  %v176_v48 = vadd.f32 %v175_v46, %v1941_v26  ;;  %v253_v51 = vadd.f32 %v252_v49, %v1941_v26  ;;  %v1585_v33 = vld [vmem:[%s2441_s1 + $0x1c] sm:$0xf] }
  0xf7   :  { %vm843_vm1 = vcmp.lt.s32.totalorder %v2144_v30, 112  ;;  %v858_v43 = vrot.slane %v1585_v33, %v1929_v19  ;;  %v866_v49 = vrot.slane %v1585_v33, %v1934_v22  ;;  %vm759_vm2 = vcmp.lt.s32.totalorder %v2144_v30, 113 }
  0xf8   :  { %743 = vrot.lane.b32.xlu0 %v255_v27, %s1838_s30  ;;  %829 = vrot.lane.b32.xlu1 %v259_v35, %s1837_s29  ;;  %v1955_v38 = vmul.f32 %v606_v31, %v259_v35  ;;  %v1959_v40 = vmul.f32 %v614_v34, %v261_v36  ;;  %v2004_v50 = vmax.f32 %v176_v48, 0.0  ;;  %v2011_v52 = vmax.f32 %v253_v51, 0.0 }
  0xf9   :  { %v2153_v34 = vsub.s32 1, %v1924_v15  ;;  %v2166_v48 = vsub.s32 3, %v1924_v15  ;;  %vm675_vm3 = vcmp.lt.s32.totalorder %v2144_v30, 127  ;;  %vm532_vm4 = vcmp.lt.s32.totalorder %v2144_v30, 1 }
  0xfa   :  { %vm448_vm5 = vcmp.lt.s32.totalorder %v2144_v30, 15  ;;  %vm364_vm6 = vcmp.lt.s32.totalorder %v2144_v30, 16  ;;  %vm281_vm7 = vcmp.lt.s32.totalorder %v2144_v30, 17  ;;  %vm927_vm8 = vcmp.lt.s32.totalorder %v2144_v30, 111 }
  0xfb   :  { %v862_v14 = vrot.slane %v1585_v33, %v2153_v34 }
  0xfc   :  { %751 = vrot.lane.b32.xlu0 %v257_v28, %s1838_s30  ;;  %837 = vrot.lane.b32.xlu1 %v261_v36, %s1837_s29 }
 0x100   :  { %659 = vrot.lane.b32.xlu0 %v255_v27, %s1839_s9  ;;  %745 = vrot.lane.b32.xlu1 %v259_v35, %s1838_s30 }
 0x104   :  { %667 = vrot.lane.b32.xlu0 %v257_v28, %s1839_s9  ;;  %753 = vrot.lane.b32.xlu1 %v261_v36, %s1838_s30 }
 0x108   :  { %516 = vrot.lane.b32.xlu0 %v255_v27, %s1840_s10  ;;  %661 = vrot.lane.b32.xlu1 %v259_v35, %s1839_s9 }
 0x10c   :  { %524 = vrot.lane.b32.xlu0 %v257_v28, %s1840_s10  ;;  %669 = vrot.lane.b32.xlu1 %v261_v36, %s1839_s9 }
 0x110   :  { %432 = vrot.lane.b32.xlu0 %v255_v27, %s1841_s11  ;;  %518 = vrot.lane.b32.xlu1 %v259_v35, %s1840_s10 }
 0x114   :  { %440 = vrot.lane.b32.xlu0 %v257_v28, %s1841_s11  ;;  %526 = vrot.lane.b32.xlu1 %v261_v36, %s1840_s10 }
 0x118   :  { %348 = vrot.lane.b32.xlu0 %v255_v27, %s1842_s12  ;;  %434 = vrot.lane.b32.xlu1 %v259_v35, %s1841_s11 }
 0x11c   :  { %356 = vrot.lane.b32.xlu0 %v257_v28, %s1842_s12  ;;  %442 = vrot.lane.b32.xlu1 %v261_v36, %s1841_s11 }
 0x120   :  { %263 = vrot.lane.b32.xlu0 %v255_v27, %s1843_s13  ;;  %350 = vrot.lane.b32.xlu1 %v259_v35, %s1842_s12 }
 0x124   :  { %271 = vrot.lane.b32.xlu0 %v257_v28, %s1843_s13  ;;  %358 = vrot.lane.b32.xlu1 %v261_v36, %s1842_s12 }
 0x128   :  { %911 = vrot.lane.b32.xlu0 %v255_v27, %s1844_s14  ;;  %265 = vrot.lane.b32.xlu1 %v259_v35, %s1843_s13 }
 0x12c   :  { %919 = vrot.lane.b32.xlu0 %v257_v28, %s1844_s14  ;;  %273 = vrot.lane.b32.xlu1 %v261_v36, %s1843_s13 }
 0x130   :  { %831 = vrot.lane.b32.xlu0 %v1992_v44, %s1837_s29  ;;  %913 = vrot.lane.b32.xlu1 %v259_v35, %s1844_s14 }
 0x134   :  { %839 = vrot.lane.b32.xlu0 %v1998_v47, %s1837_s29  ;;  %921 = vrot.lane.b32.xlu1 %v261_v36, %s1844_s14 }
 0x138   :  { %747 = vrot.lane.b32.xlu0 %v1992_v44, %s1838_s30  ;;  %833 = vrot.lane.b32.xlu1 %v2004_v50, %s1837_s29 }
 0x13c   :  { %755 = vrot.lane.b32.xlu0 %v1998_v47, %s1838_s30  ;;  %841 = vrot.lane.b32.xlu1 %v2011_v52, %s1837_s29 }
 0x140   :  { %663 = vrot.lane.b32.xlu0 %v1992_v44, %s1839_s9  ;;  %749 = vrot.lane.b32.xlu1 %v2004_v50, %s1838_s30 }
 0x144   :  { %671 = vrot.lane.b32.xlu0 %v1998_v47, %s1839_s9  ;;  %757 = vrot.lane.b32.xlu1 %v2011_v52, %s1838_s30 }
 0x148   :  { %520 = vrot.lane.b32.xlu0 %v1992_v44, %s1840_s10  ;;  %665 = vrot.lane.b32.xlu1 %v2004_v50, %s1839_s9 }
 0x14c   :  { %528 = vrot.lane.b32.xlu0 %v1998_v47, %s1840_s10  ;;  %673 = vrot.lane.b32.xlu1 %v2011_v52, %s1839_s9 }
 0x150   :  { %436 = vrot.lane.b32.xlu0 %v1992_v44, %s1841_s11  ;;  %522 = vrot.lane.b32.xlu1 %v2004_v50, %s1840_s10 }
 0x154   :  { %444 = vrot.lane.b32.xlu0 %v1998_v47, %s1841_s11  ;;  %530 = vrot.lane.b32.xlu1 %v2011_v52, %s1840_s10 }
 0x158   :  { %352 = vrot.lane.b32.xlu0 %v1992_v44, %s1842_s12  ;;  %438 = vrot.lane.b32.xlu1 %v2004_v50, %s1841_s11 }
 0x15c   :  { %360 = vrot.lane.b32.xlu0 %v1998_v47, %s1842_s12  ;;  %446 = vrot.lane.b32.xlu1 %v2011_v52, %s1841_s11 }
 0x160   :  { %267 = vrot.lane.b32.xlu0 %v1992_v44, %s1843_s13  ;;  %354 = vrot.lane.b32.xlu1 %v2004_v50, %s1842_s12 }
 0x164   :  { %275 = vrot.lane.b32.xlu0 %v1998_v47, %s1843_s13  ;;  %362 = vrot.lane.b32.xlu1 %v2011_v52, %s1842_s12 }
 0x166   :  { %v2057_v53 = vpop.permute.xlu0 %835  ;;  %v2059_v54 = vpop.permute.xlu1 %827 }
 0x168   :  { %915 = vrot.lane.b32.xlu0 %v1992_v44, %s1844_s14  ;;  %269 = vrot.lane.b32.xlu1 %v2004_v50, %s1843_s13 }
 0x16a   :  { %v2065_v55 = vpop.permute.xlu0 %743  ;;  %v2067_v56 = vpop.permute.xlu1 %829 }
 0x16c   :  { %923 = vrot.lane.b32.xlu0 %v1998_v47, %s1844_s14  ;;  %277 = vrot.lane.b32.xlu1 %v2011_v52, %s1843_s13 }
 0x16e   :  { %v2078_v59 = vpop.permute.xlu0 %751  ;;  %v2080_v60 = vpop.permute.xlu1 %837 }
 0x170   :  { %1042 = vperm.xlu0 %1729, %v1034_v58   ;;  %917 = vrot.lane.b32.xlu1 %v2004_v50, %s1844_s14 }
 0x172   :  { %v2087_v62 = vpop.permute.xlu0 %659  ;;  %v2089_v63 = vpop.permute.xlu1 %745 }
 0x174   :  { %1337 = vperm.xlu0 %1729, %v1333_v61   ;;  %925 = vrot.lane.b32.xlu1 %v2011_v52, %s1844_s14  ;;  %v870_v61 = vrot.slane %v1585_v33, %v2166_v48 }
 0x176   :  { %v2096_v2 = vpop.permute.xlu0 %667  ;;  %v2098_v3 = vpop.permute.xlu1 %753 }
 0x178   :  { %1037 = vperm.xlu1 %1730, %v1033_v1   ;;  %v1580_v1 = vld [vmem:[%s2441_s1 + $0x18] sm:$0xf] }
 0x179   :  { %v774_v41 = vrot.slane %v1580_v1, %v1929_v19 }
 0x17a   :  { %v2103_v5 = vpop.permute.xlu0 %516  ;;  %v2105_v6 = vpop.permute.xlu1 %661 }
 0x17c   :  { %1342 = vperm.xlu1 %1730, %v1334_v4  }
 0x17e   :  { %v2107_v7 = vpop.permute.xlu0 %524  ;;  %v2109_v8 = vpop.permute.xlu1 %669 }
 0x182   :  { %v2111_v9 = vpop.permute.xlu0 %432  ;;  %v2113_v10 = vpop.permute.xlu1 %518 }
 0x186   :  { %v2115_v11 = vpop.permute.xlu0 %440  ;;  %v2117_v12 = vpop.permute.xlu1 %526 }
 0x18a   :  { %v2119_v13 = vpop.permute.xlu0 %348  ;;  %v2121_v16 = vpop.permute.xlu1 %434 }
 0x18e   :  { %v2123_v17 = vpop.permute.xlu0 %356  ;;  %v2125_v18 = vpop.permute.xlu1 %442 }
 0x192   :  { %v2127_v20 = vpop.permute.xlu0 %263  ;;  %v2129_v21 = vpop.permute.xlu1 %350 }
 0x196   :  { %v2131_v24 = vpop.permute.xlu0 %271  ;;  %v2133_v25 = vpop.permute.xlu1 %358 }
 0x19a   :  { %v2135_v26 = vpop.permute.xlu0 %911  ;;  %v2137_v27 = vpop.permute.xlu1 %265 }
 0x19b   :  { %2455 = vst [vmem:[#allocation13_spill] sm:$0xff] %v2135_v26 }
 0x19e   :  { %v2139_v28 = vpop.permute.xlu0 %919  ;;  %v2141_v29 = vpop.permute.xlu1 %273 }
 0x19f   :  { %2456 = vst [vmem:[#allocation14_spill] sm:$0xff] %v2139_v28 }
 0x1a2   :  { %v832_v31 = vpop.permute.xlu0 %831  ;;  %v2146_v32 = vpop.permute.xlu1 %913 }
 0x1a3   :  { %2457 = vst [vmem:[#allocation15_spill] sm:$0xff] %v2146_v32  ;;  %v848_v45 = vsel %vm843_vm1, %v2059_v54, %v832_v31  ;;  %v846_v46 = vsel %vm843_vm1, %v832_v31, %v2057_v53 }
 0x1a4   :  { %v875_v58 = vmul.f32 %v858_v43, %v848_v45  ;;  %v876_v31 = vmul.f32 %v862_v14, %v846_v46  ;;  %v778_v46 = vrot.slane %v1580_v1, %v2153_v34 }
 0x1a6   :  { %v840_v35 = vpop.permute.xlu0 %839  ;;  %v2155_v36 = vpop.permute.xlu1 %921 }
 0x1a7   :  { %2458 = vst [vmem:[#allocation16_spill] sm:$0xff] %v2155_v36  ;;  %v844_v0 = vsel %vm843_vm1, %v2057_v53, %v840_v35  ;;  %v850_v33 = vsel %vm843_vm1, %v840_v35, %v2059_v54 }
 0x1a8   :  { %v878_v54 = vmul.f32 %v870_v61, %v850_v33 }
 0x1aa   :  { %v748_v51 = vpop.permute.xlu0 %747  ;;  %v834_v57 = vpop.permute.xlu1 %833 }
 0x1ab   :  { %v847_v4 = vsel %vm843_vm1, %v834_v57, %v2080_v60  ;;  %v849_v15 = vsel %vm843_vm1, %v2067_v56, %v834_v57  ;;  %v877_v57 = vmul.f32 %v866_v49, %v844_v0  ;;  %v764_v35 = vsel %vm759_vm2, %v2065_v55, %v748_v51 }
 0x1ac   :  { %v879_v45 = vmul.f32 %v858_v43, %v849_v15  ;;  %v880_v42 = vmul.f32 %v862_v14, %v847_v4  ;;  %v762_v0 = vsel %vm759_vm2, %v748_v51, %v2078_v59 }
 0x1ad   :  { %v792_v51 = vmul.f32 %v778_v46, %v762_v0 }
 0x1ae   :  { %v1703_v32 = vpack.c.bf16 %v879_v45, %v875_v58  ;;  %v756_v36 = vpop.permute.xlu0 %755  ;;  %v842_v28 = vpop.permute.xlu1 %841  ;;  %v1704_v26 = vpack.c.bf16 %v880_v42, %v876_v31  ;;  %v782_v42 = vrot.slane %v1580_v1, %v1934_v22 }
 0x1af   :  { %v845_v53 = vsel %vm843_vm1, %v2080_v60, %v842_v28  ;;  %v851_v43 = vsel %vm843_vm1, %v842_v28, %v2067_v56  ;;  %v791_v56 = vmul.f32 %v774_v41, %v764_v35  ;;  %v786_v28 = vrot.slane %v1580_v1, %v2166_v48 }
 0x1b0   :  { %v881_v14 = vmul.f32 %v866_v49, %v845_v53  ;;  %v882_v58 = vmul.f32 %v870_v61, %v851_v43  ;;  %1237 = vmatprep.subr.bf16.mxu0 %v1704_v26  ;;  %v1575_v49 = vld [vmem:[%s2441_s1 + $0x14] sm:$0xf]  ;;  %v760_v61 = vsel %vm759_vm2, %v2078_v59, %v756_v36  ;;  %v766_v1 = vsel %vm759_vm2, %v756_v36, %v2065_v55 }
 0x1b1   :  { %1238 = vmatpush1.bf16.msra.mxu0 %v1703_v32  ;;  %v690_v53 = vrot.slane %v1575_v49, %v1929_v19  ;;  %v793_v59 = vmul.f32 %v782_v42, %v760_v61  ;;  %v794_v36 = vmul.f32 %v786_v28, %v766_v1  ;;  %v702_v61 = vrot.slane %v1575_v49, %v2166_v48 }
 0x1b2   :  { %v1705_v60 = vpack.c.bf16 %v881_v14, %v877_v57  ;;  %v664_v4 = vpop.permute.xlu0 %663  ;;  %v750_v15 = vpop.permute.xlu1 %749  ;;  %v1706_v31 = vpack.c.bf16 %v882_v58, %v878_v54  ;;  %v610_v57 = vrot.slane %v1939_v23, %v2153_v34 }
 0x1b3   :  { %v763_v26 = vsel %vm759_vm2, %v750_v15, %v2098_v3  ;;  %v765_v32 = vsel %vm759_vm2, %v2089_v63, %v750_v15  ;;  %v680_v58 = vsel %vm675_vm3, %v2087_v62, %v664_v4  ;;  %v678_v15 = vsel %vm675_vm3, %v664_v4, %v2096_v2  ;;  %v1565_v4 = vld [vmem:[%s2441_s1 + $0xc] sm:$0xf] }
 0x1b4   :  { %v795_v45 = vmul.f32 %v774_v41, %v765_v32  ;;  %v796_v33 = vmul.f32 %v778_v46, %v763_v26  ;;  %1280 = vmatprep.subr.bf16.mxu1 %v1706_v31  ;;  %v694_v41 = vrot.slane %v1575_v49, %v2153_v34  ;;  %v624_v31 = vmul.f32 %v610_v57, %v1992_v44 }
 0x1b5   :  { %1281 = vmatpush1.bf16.msra.mxu1 %v1705_v60 }
 0x1b6   :  { %v1699_v43 = vpack.c.bf16 %v795_v45, %v791_v56  ;;  %v672_v54 = vpop.permute.xlu0 %671  ;;  %v758_v35 = vpop.permute.xlu1 %757  ;;  %v1700_v14 = vpack.c.bf16 %v796_v33, %v792_v51  ;;  %v708_v45 = vmul.f32 %v694_v41, %v678_v15 }
 0x1b7   :  { %v761_v46 = vsel %vm759_vm2, %v2098_v3, %v758_v35  ;;  %v767_v55 = vsel %vm759_vm2, %v758_v35, %v2089_v63  ;;  %v618_v3 = vrot.slane %v1939_v23, %v2166_v48  ;;  %v698_v63 = vrot.slane %v1575_v49, %v1934_v22 }
 0x1b8   :  { %v797_v0 = vmul.f32 %v782_v42, %v761_v46  ;;  %v798_v60 = vmul.f32 %v786_v28, %v767_v55  ;;  %1239 = vmatprep.subr.bf16.mxu0 %v1700_v14  ;;  %v628_v42 = vmul.f32 %v610_v57, %v2004_v50  ;;  %v707_v28 = vmul.f32 %v690_v53, %v680_v58 }
 0x1b9   :  { %1240 = vmatpush1.bf16.msra.mxu0 %v1699_v43  ;;  %v676_v50 = vsel %vm675_vm3, %v2096_v2, %v672_v54  ;;  %v682_v49 = vsel %vm675_vm3, %v672_v54, %v2087_v62  ;;  %v626_v57 = vmul.f32 %v618_v3, %v1998_v47  ;;  %v630_v43 = vmul.f32 %v618_v3, %v2011_v52 }
 0x1ba   :  { %v1701_v56 = vpack.c.bf16 %v797_v0, %v793_v59  ;;  %v521_v26 = vpop.permute.xlu0 %520  ;;  %v666_v32 = vpop.permute.xlu1 %665  ;;  %v1702_v51 = vpack.c.bf16 %v798_v60, %v794_v36  ;;  %v551_v35 = vrot.slane %v1565_v4, %v2153_v34  ;;  %v555_v55 = vrot.slane %v1565_v4, %v1934_v22 }
 0x1bb   :  { %v679_v44 = vsel %vm675_vm3, %v666_v32, %v2109_v8  ;;  %v681_v23 = vsel %vm675_vm3, %v2105_v6, %v666_v32  ;;  %v710_v54 = vmul.f32 %v702_v61, %v682_v49  ;;  %v537_v52 = vsel %vm532_vm4, %v2103_v5, %v521_v26 }
 0x1bc   :  { %v711_v33 = vmul.f32 %v690_v53, %v681_v23  ;;  %v712_v1 = vmul.f32 %v694_v41, %v679_v44  ;;  %1282 = vmatprep.subr.bf16.mxu1 %v1702_v51  ;;  %v1692_v53 = vpack.c.bf16 %v628_v42, %v624_v31  ;;  %v709_v41 = vmul.f32 %v698_v63, %v676_v50 }
 0x1bd   :  { %1283 = vmatpush1.bf16.msra.mxu1 %v1701_v56  ;;  %v535_v0 = vsel %vm532_vm4, %v521_v26, %v2107_v7  ;;  %v547_v60 = vrot.slane %v1565_v4, %v1929_v19  ;;  %v1694_v3 = vpack.c.bf16 %v630_v43, %v626_v57  ;;  %v565_v56 = vmul.f32 %v551_v35, %v537_v52 }
 0x1be   :  { %v1695_v14 = vpack.c.bf16 %v711_v33, %v707_v28  ;;  %v529_v59 = vpop.permute.xlu0 %528  ;;  %v674_v46 = vpop.permute.xlu1 %673  ;;  %v1696_v2 = vpack.c.bf16 %v712_v1, %v708_v45  ;;  %v559_v32 = vrot.slane %v1565_v4, %v2166_v48  ;;  %v566_v42 = vmul.f32 %v555_v55, %v535_v0 }
 0x1bf   :  { %v677_v62 = vsel %vm675_vm3, %v2109_v8, %v674_v46  ;;  %v683_v47 = vsel %vm675_vm3, %v674_v46, %v2105_v6  ;;  %v539_v28 = vsel %vm532_vm4, %v529_v59, %v2103_v5  ;;  %v533_v4 = vsel %vm532_vm4, %v2107_v7, %v529_v59 }
 0x1c0   :  { %v713_v36 = vmul.f32 %v698_v63, %v677_v62  ;;  %v714_v58 = vmul.f32 %v702_v61, %v683_v47  ;;  %1241 = vmatprep.subr.bf16.mxu0 %v1696_v2  ;;  %v1560_v63 = vld [vmem:[%s2441_s1 + $0x8] sm:$0xf]  ;;  %v2459_v23 = vpack.c.bf16 %v1955_v38, %v1951_v37  ;;  %v564_v49 = vmul.f32 %v547_v60, %v539_v28  ;;  %v1555_v47 = vld [vmem:[%s2441_s1 + $0x4] sm:$0xf] }
 0x1c1   :  { %1242 = vmatpush1.bf16.msra.mxu0 %v1695_v14  ;;  %v467_v45 = vrot.slane %v1560_v63, %v2153_v34  ;;  %v471_v57 = vrot.slane %v1560_v63, %v1934_v22  ;;  %v567_v38 = vmul.f32 %v559_v32, %v533_v4  ;;  %v2460_v46 = vpack.c.bf16 %v1959_v40, %v1957_v39 }
 0x1c2   :  { %v1697_v8 = vpack.c.bf16 %v713_v36, %v709_v41  ;;  %v437_v15 = vpop.permute.xlu0 %436  ;;  %1243 = vmatprep.subr.bf16.mxu0 %v1692_v53  ;;  %v523_v31 = vpop.permute.xlu1 %522  ;;  %v1698_v6 = vpack.c.bf16 %v714_v58, %v710_v54  ;;  %v475_v62 = vrot.slane %v1560_v63, %v2166_v48  ;;  %v379_v28 = vrot.slane %v1555_v47, %v1929_v19 }
 0x1c3   :  { %v536_v26 = vsel %vm532_vm4, %v523_v31, %v2117_v12  ;;  %v538_v51 = vsel %vm532_vm4, %v2113_v10, %v523_v31  ;;  %v453_v43 = vsel %vm448_vm5, %v2111_v9, %v437_v15  ;;  %v451_v59 = vsel %vm448_vm5, %v437_v15, %v2115_v11 }
 0x1c4   :  { %v569_v61 = vmul.f32 %v551_v35, %v538_v51  ;;  %v570_v44 = vmul.f32 %v555_v55, %v536_v26  ;;  %1284 = vmatprep.subr.bf16.mxu1 %v1698_v6  ;;  %v481_v55 = vmul.f32 %v467_v45, %v453_v43  ;;  %v482_v40 = vmul.f32 %v471_v57, %v451_v59 }
 0x1c5   :  { %1244 = vmatpush1.bf16.msra.mxu0 %v2459_v23  ;;  %1285 = vmatpush1.bf16.msra.mxu1 %v1697_v8 }
 0x1c6   :  { %v1689_v50 = vpack.c.bf16 %v570_v44, %v566_v42  ;;  %v445_v33 = vpop.permute.xlu0 %444  ;;  %1286 = vmatprep.subr.bf16.mxu1 %v1694_v3  ;;  %v531_v5 = vpop.permute.xlu1 %530  ;;  %v1688_v1 = vpack.c.bf16 %v569_v61, %v565_v56 }
 0x1c7   :  { %v534_v7 = vsel %vm532_vm4, %v2117_v12, %v531_v5  ;;  %v540_v37 = vsel %vm532_vm4, %v531_v5, %v2113_v10  ;;  %v463_v12 = vrot.slane %v1560_v63, %v1929_v19  ;;  %v455_v52 = vsel %vm448_vm5, %v445_v33, %v2111_v9 }
 0x1c8   :  { %v568_v35 = vmul.f32 %v547_v60, %v540_v37  ;;  %v571_v14 = vmul.f32 %v559_v32, %v534_v7  ;;  %1245 = vmatprep.subr.bf16.mxu0 %v1688_v1  ;;  %v449_v0 = vsel %vm448_vm5, %v2115_v11, %v445_v33  ;;  %v383_v60 = vrot.slane %v1555_v47, %v2153_v34 }
 0x1c9   :  { %1287 = vmatpush1.bf16.msra.mxu1 %v2460_v46  ;;  %v480_v3 = vmul.f32 %v463_v12, %v455_v52  ;;  %v387_v9 = vrot.slane %v1555_v47, %v1934_v22  ;;  %v483_v32 = vmul.f32 %v475_v62, %v449_v0 }
 0x1ca   :  { %v1687_v2 = vpack.c.bf16 %v568_v35, %v564_v49  ;;  %v353_v10 = vpop.permute.xlu0 %352  ;;  %v439_v53 = vpop.permute.xlu1 %438  ;;  %v1690_v41 = vpack.c.bf16 %v571_v14, %v567_v38 }
 0x1cb   :  { %v452_v54 = vsel %vm448_vm5, %v439_v53, %v2125_v18  ;;  %v454_v39 = vsel %vm448_vm5, %v2121_v16, %v439_v53  ;;  %v369_v63 = vsel %vm364_vm6, %v2119_v13, %v353_v10  ;;  %v367_v42 = vsel %vm364_vm6, %v353_v10, %v2123_v17 }
 0x1cc   :  { %v485_v36 = vmul.f32 %v467_v45, %v454_v39  ;;  %v486_v58 = vmul.f32 %v471_v57, %v452_v54  ;;  %1246 = vmatpush1.bf16.msra.mxu0 %v1687_v2  ;;  %1288 = vmatprep.subr.bf16.mxu1 %v1690_v41  ;;  %v397_v23 = vmul.f32 %v383_v60, %v369_v63  ;;  %v290_v45 = vld [vmem:[%s2441_s1] sm:$0xf] }
 0x1cd   :  { %1289 = vmatpush1.bf16.msra.mxu1 %v1689_v50  ;;  %v398_v5 = vmul.f32 %v387_v9, %v367_v42  ;;  %v299_v37 = vrot.slane %v290_v45, %v2153_v34  ;;  %v1590_v39 = vld [vmem:[%s2441_s1 + $0x20] sm:$0xf]  ;;  %v2462_v42 = vld [vmem:[#allocation14_spill] sm:$0xff]  ;;  %s1845_s1 = smov [#allocation9]  }
 0x1ce   :  { %v1685_v8 = vpack.c.bf16 %v486_v58, %v482_v40  ;;  %v361_v15 = vpop.permute.xlu0 %360  ;;  %v447_v31 = vpop.permute.xlu1 %446  ;;  %v1684_v6 = vpack.c.bf16 %v485_v36, %v481_v55  ;;  %v295_v55 = vrot.slane %v290_v45, %v1929_v19  ;;  %v2461_v63 = vld [vmem:[#allocation13_spill] sm:$0xff]  ;;  %s1534_s12 = sshll.u32 %s1845_s1, 4  ;;  %s1535_s12 = int_to_ptr.vmem [resolvable:$true] %s1534_s12 }
 0x1cf   :  { %v450_v56 = vsel %vm448_vm5, %v2125_v18, %v447_v31  ;;  %v456_v11 = vsel %vm448_vm5, %v447_v31, %v2121_v16  ;;  %v391_v16 = vrot.slane %v1555_v47, %v2166_v48  ;;  %v371_v1 = vsel %vm364_vm6, %v361_v15, %v2119_v13  ;;  %s1802_s13 = scalar_lea.vmem %s1535_s12, 1024  ;;  %p1807_p2 = scmp.lt.s32.totalorder %s1535_s12, %s1535_s12 }
 0x1d0   :  { %v484_v26 = vmul.f32 %v463_v12, %v456_v11  ;;  %v487_v51 = vmul.f32 %v475_v62, %v450_v56  ;;  %1247 = vmatprep.subr.bf16.mxu0 %v1684_v6  ;;  %v365_v7 = vsel %vm364_vm6, %v2123_v17, %v361_v15  ;;  %v396_v59 = vmul.f32 %v379_v28, %v371_v1  ;;  %p1803_p1 = scmp.ne.s32.totalorder %s1535_s12, %s1802_s13  ;;  %p1808_p3 = scmp.lt.s32.totalorder %s1802_s13, %s1802_s13 }
 0x1d1   :  { %v303_v13 = vrot.slane %v290_v45, %v1934_v22  ;;  %v399_v12 = vmul.f32 %v391_v16, %v365_v7  ;;  %v942_v31 = vrot.slane %v1590_v39, %v1929_v19 }
 0x1d2   :  { %v1683_v61 = vpack.c.bf16 %v484_v26, %v480_v3  ;;  %v268_v18 = vpop.permute.xlu0 %267  ;;  %v355_v44 = vpop.permute.xlu1 %354  ;;  %v1686_v4 = vpack.c.bf16 %v487_v51, %v483_v32  ;;  %p1809_p4 = por %p1808_p3, %p1807_p2 }
 0x1d3   :  { %v368_v50 = vsel %vm364_vm6, %v355_v44, %v2133_v25  ;;  %v370_v33 = vsel %vm364_vm6, %v2129_v21, %v355_v44  ;;  %v286_v2 = vsel %vm281_vm7, %v2127_v20, %v268_v18  ;;  %v284_v41 = vsel %vm281_vm7, %v268_v18, %v2131_v24 }
 0x1d4   :  { %v401_v49 = vmul.f32 %v383_v60, %v370_v33  ;;  %v402_v57 = vmul.f32 %v387_v9, %v368_v50  ;;  %1248 = vmatpush1.bf16.msra.mxu0 %v1683_v61  ;;  %1290 = vmatprep.subr.bf16.mxu1 %v1686_v4  ;;  %v313_v54 = vmul.f32 %v299_v37, %v286_v2  ;;  %p1810_p5 = pnand %p1809_p4, %p1803_p1 }
 0x1d5   :  { %1291 = vmatpush1.bf16.msra.mxu1 %v1685_v8  ;;  %v314_v36 = vmul.f32 %v303_v13, %v284_v41 }
 0x1d6   :  { %v1681_v38 = vpack.c.bf16 %v402_v57, %v398_v5  ;;  %v276_v43 = vpop.permute.xlu0 %275  ;;  %v363_v35 = vpop.permute.xlu1 %362  ;;  %v1680_v14 = vpack.c.bf16 %v401_v49, %v397_v23  ;;  %v2463_v23 = vld [vmem:[#allocation16_spill] sm:$0xff] }
 0x1d7   :  { %v366_v46 = vsel %vm364_vm6, %v2133_v25, %v363_v35  ;;  %v372_v17 = vsel %vm364_vm6, %v363_v35, %v2129_v21  ;;  %v307_v21 = vrot.slane %v290_v45, %v2166_v48  ;;  %v288_v58 = vsel %vm281_vm7, %v276_v43, %v2127_v20  ;;  %v2464_v45 = vld [vmem:[#allocation15_spill] sm:$0xff] }
 0x1d8   :  { %v400_v10 = vmul.f32 %v379_v28, %v372_v17  ;;  %v403_v53 = vmul.f32 %v391_v16, %v366_v46  ;;  %1249 = vmatprep.subr.bf16.mxu0 %v1680_v14  ;;  %v282_v15 = vsel %vm281_vm7, %v2131_v24, %v276_v43  ;;  %v312_v56 = vmul.f32 %v295_v55, %v288_v58 }
 0x1d9   :  { %v946_v20 = vrot.slane %v1590_v39, %v2153_v34  ;;  %v315_v32 = vmul.f32 %v307_v21, %v282_v15  ;;  %v950_v28 = vrot.slane %v1590_v39, %v1934_v22 }
 0x1da   :  { %v1679_v62 = vpack.c.bf16 %v400_v10, %v396_v59  ;;  %v270_v25 = vpop.permute.xlu1 %269  ;;  %v1682_v47 = vpack.c.bf16 %v403_v53, %v399_v12  ;;  %v916_v0 = vpop.permute.xlu0 %915  ;;  %v2465_v12 = vmov 0.0  }
 0x1db   :  { %v285_v40 = vsel %vm281_vm7, %v270_v25, %v2141_v29  ;;  %v287_v52 = vsel %vm281_vm7, %v2137_v27, %v270_v25  ;;  %v932_v19 = vsel %vm927_vm8, %v2461_v63, %v916_v0  ;;  %v930_v34 = vsel %vm927_vm8, %v916_v0, %v2462_v42 }
 0x1dc   :  { %v317_v60 = vmul.f32 %v299_v37, %v287_v52  ;;  %v318_v8 = vmul.f32 %v303_v13, %v285_v40  ;;  %1250 = vmatpush1.bf16.msra.mxu0 %v1679_v62  ;;  %1292 = vmatprep.subr.bf16.mxu1 %v1682_v47  ;;  %v959_v4 = vmul.f32 %v942_v31, %v932_v19  ;;  %v1731_v13 = vld [vmem:[#allocation6] ss:$8 sps:$4 sm:$0xff]  }
 0x1dd   :  { %1293 = vmatpush1.bf16.msra.mxu1 %v1681_v38  ;;  %v960_v33 = vmul.f32 %v946_v20, %v930_v34 }
 0x1de   :  { %v1677_v6 = vpack.c.bf16 %v318_v8, %v314_v36  ;;  %v278_v3 = vpop.permute.xlu1 %277  ;;  %v1676_v9 = vpack.c.bf16 %v317_v60, %v313_v54  ;;  %v924_v61 = vpop.permute.xlu0 %923 }
 0x1df   :  { %v283_v11 = vsel %vm281_vm7, %v2141_v29, %v278_v3  ;;  %v289_v24 = vsel %vm281_vm7, %v278_v3, %v2137_v27  ;;  %v954_v27 = vrot.slane %v1590_v39, %v2166_v48  ;;  %v928_v22 = vsel %vm927_vm8, %v2462_v42, %v924_v61  ;;  %v1331_v3 = vld [vmem:[#allocation8] sm:$0xff]  ;;  %v1734_v42 = vld [vmem:[#allocation3] sm:$0xff] }
 0x1e0   :  { %v316_v26 = vmul.f32 %v295_v55, %v289_v24  ;;  %v319_v51 = vmul.f32 %v307_v21, %v283_v11  ;;  %1251 = vmatprep.subr.bf16.mxu0 %v1676_v9  ;;  %v934_v48 = vsel %vm927_vm8, %v924_v61, %v2461_v63  ;;  %v961_v43 = vmul.f32 %v950_v28, %v928_v22  ;;  %v1332_v24 = vld [vmem:[#allocation8 + $0x8] sm:$0xff] }
 0x1e1   :  { %v962_v35 = vmul.f32 %v954_v27, %v934_v48 }
 0x1e2   :  { %v1675_v29 = vpack.c.bf16 %v316_v26, %v312_v56  ;;  %v918_v18 = vpop.permute.xlu1 %917  ;;  %v1678_v44 = vpack.c.bf16 %v319_v51, %v315_v32 }
 0x1e3   :  { %v931_v16 = vsel %vm927_vm8, %v918_v18, %v2463_v23  ;;  %v933_v50 = vsel %vm927_vm8, %v2464_v45, %v918_v18 }
 0x1e4   :  { %v963_v5 = vmul.f32 %v942_v31, %v933_v50  ;;  %v964_v1 = vmul.f32 %v946_v20, %v931_v16  ;;  %1252 = vmatpush1.bf16.msra.mxu0 %v1675_v29  ;;  %1294 = vmatprep.subr.bf16.mxu1 %v1678_v44  ;;  %v1735_v44 = vld [vmem:[#allocation3 + $0x8] sm:$0xff] }
 0x1e5   :  { %1295 = vmatpush1.bf16.msra.mxu1 %v1677_v6 }
 0x1e6   :  { %v1707_v49 = vpack.c.bf16 %v963_v5, %v959_v4  ;;  %v926_v57 = vpop.permute.xlu1 %925  ;;  %v1708_v7 = vpack.c.bf16 %v964_v1, %v960_v33  ;;  %v1736_v33 = vld [vmem:[#allocation3 + $0x20] sm:$0xff]  ;;  %v1737_v1 = vld [vmem:[#allocation3 + $0x10] sm:$0xff] }
 0x1e7   :  { %v929_v37 = vsel %vm927_vm8, %v2463_v23, %v926_v57  ;;  %v935_v38 = vsel %vm927_vm8, %v926_v57, %v2464_v45 }
 0x1e8   :  { %v965_v14 = vmul.f32 %v950_v28, %v929_v37  ;;  %v966_v59 = vmul.f32 %v954_v27, %v935_v38  ;;  %1267 = vmatprep.subr.bf16.mxu0 %v1708_v7  ;;  %v1738_v38 = vld [vmem:[#allocation3 + $0x28] sm:$0xff] }
 0x1e9   :  { %1268 = vmatpush2.bf16.msra.mxu0 %v1707_v49 }
 0x1ea   :  { %v1709_v46 = vpack.c.bf16 %v965_v14, %v961_v43  ;;  %v1710_v17 = vpack.c.bf16 %v966_v59, %v962_v35  ;;  %v1739_v14 = vld [vmem:[#allocation3 + $0x18] sm:$0xff] }
 0x1eb   :  { %v1043_v55 = vpop.permute.xlu0 %1042 }
 0x1ec   :  { %1270 = vmatmul.mubr.bf16.vlgmr.msra.gmra.mxu0 %v1731_v13  ;;  %1310 = vmatprep.subr.bf16.mxu1 %v1710_v17  ;;  %v1740_v17 = vld [vmem:[#allocation3 + $0x30] sm:$0xff] }
 0x1ed   :  { %1311 = vmatpush2.bf16.msra.mxu1 %v1709_v46  ;;  %1415 = vmatprep.mubr.f32.mxu0 %v2465_v12 }
 0x1ef   :  { %v1338_v32 = vpop.permute.xlu0 %1337 }
 0x1f0   :  { %1313 = vmatmul.mubr.bf16.vlgmr.msra.gmra.mxu1 %v1731_v13 }
 0x1f1   :  { %1492 = vmatprep.mubr.f32.mxu1 %v2465_v12 }
 0x1f3   :  { %v1038_v10 = vpop.permute.xlu1 %1037 }
 0x1f7   :  { %v1343_v51 = vpop.permute.xlu1 %1342 }
 0x2ac   :  { %v1271_v2 = vpop.f32.mrf.mxu0 }
 0x2ad   :  { %v1272_v39 = vadd.f32 %v1271_v2, %v1038_v10 }
 0x2ae   :  { %v1273_v30 = vpop.f32.mrf.mxu0 }
 0x2af   :  { %v1274_v21 = vadd.f32 %v1273_v30, %v1038_v10  ;;  %v1323_v6 = vmax.f32 %v1272_v39, 0.0 }
 0x2b0   :  { %v1314_v53 = vpop.f32.mrf.mxu1  ;;  %v1275_v41 = vpop.f32.mrf.mxu0 }
 0x2b1   :  { %v1276_v62 = vadd.f32 %v1275_v41, %v1043_v55  ;;  %v1324_v15 = vmax.f32 %v1274_v21, 0.0  ;;  %v1315_v31 = vadd.f32 %v1314_v53, %v1038_v10  ;;  %v1741_v53 = vld [vmem:[#allocation3 + $0x38] sm:$0xff] }
 0x2b2   :  { %v1277_v25 = vpop.f32.mrf.mxu0  ;;  %v1316_v47 = vpop.f32.mrf.mxu1 }
 0x2b3   :  { %v1278_v54 = vadd.f32 %v1277_v25, %v1043_v55  ;;  %v1327_v36 = vmax.f32 %v1276_v62, 0.0  ;;  %v1317_v60 = vadd.f32 %v1316_v47, %v1038_v10  ;;  %v1325_v11 = vmax.f32 %v1315_v31, 0.0 }
 0x2b4   :  { %v1318_v40 = vpop.f32.mrf.mxu1 }
 0x2b5   :  { %v1328_v52 = vmax.f32 %v1278_v54, 0.0  ;;  %v1319_v58 = vadd.f32 %v1318_v40, %v1043_v55  ;;  %v1326_v20 = vmax.f32 %v1317_v60, 0.0 }
 0x2b6   :  { %v1320_v0 = vpop.f32.mrf.mxu1 }
 0x2b7   :  { %v1321_v8 = vadd.f32 %v1320_v0, %v1043_v55  ;;  %1379 = vmatprep.subr.mxu0 %v1328_v52  ;;  %v1329_v56 = vmax.f32 %v1319_v58, 0.0 }
 0x2b8   :  { %1380 = vmatpush1.msra.mxu0 %v1327_v36 }
 0x2b9   :  { %v1330_v9 = vmax.f32 %v1321_v8, 0.0  ;;  %1381 = vmatprep.subr.mxu0 %v1324_v15 }
 0x2ba   :  { %1382 = vmatpush1.msra.mxu0 %v1323_v6 }
 0x2bb   :  { %1635 = vmatmul.mubr.msk.f32.vlgmr.msra.gmra.mxu0 %vm94_vm0, %v1331_v3  ;;  %1456 = vmatprep.subr.mxu1 %v1330_v9 }
 0x2bc   :  { %1457 = vmatpush1.msra.mxu1 %v1329_v56  ;;  %1421 = vmatprep.mubr.f32.mxu0 %v2465_v12 }
 0x2bd   :  { %1458 = vmatprep.subr.mxu1 %v1326_v20 }
 0x2be   :  { %1459 = vmatpush1.msra.mxu1 %v1325_v11 }
 0x2bf   :  { %1636 = vmatmul.mubr.msk.f32.gmra.mxu0 %vm94_vm0, %v1332_v24  ;;  %1637 = vmatmul.mubr.msk.f32.vlgmr.msra.gmra.mxu1 %vm94_vm0, %v1331_v3 }
 0x2c0   :  { %1498 = vmatprep.mubr.f32.mxu1 %v2465_v12 }
 0x2c3   :  { %1638 = vmatmul.mubr.msk.f32.gmra.mxu1 %vm94_vm0, %v1332_v24 }
 0x37b   :  { %v1417_v63 = vpop.f32.mrf.mxu0 }
 0x37c   :  { %v1418_v19 = vadd.f32 %v1417_v63, %v1338_v32 }
 0x37d   :  { %v1419_v26 = vpop.f32.mrf.mxu0 }
 0x37e   :  { %v1505_v34 = vadd.f32 %v1734_v42, %v1418_v19  ;;  %v1420_v28 = vadd.f32 %v1419_v26, %v1338_v32 }
 0x37f   :  { %v1423_v61 = vpop.f32.mrf.mxu0  ;;  %v1494_v29 = vpop.f32.mrf.mxu1 }
 0x380   :  { %v1513_v18 = vmax.f32 %v1505_v34, 0.0  ;;  %v1506_v4 = vadd.f32 %v1735_v44, %v1420_v28  ;;  %v1424_v27 = vadd.f32 %v1423_v61, %v1343_v51  ;;  %v1495_v23 = vadd.f32 %v1494_v29, %v1338_v32 }
 0x381   :  { %v1425_v16 = vpop.f32.mrf.mxu0  ;;  %v1496_v45 = vpop.f32.mrf.mxu1 }
 0x382   :  { %1521 = vst [vmem:[#allocation9] sm:$0xff] %v1513_v18  ;;  %v1514_v50 = vmax.f32 %v1506_v4, 0.0  ;;  %v1509_v5 = vadd.f32 %v1736_v33, %v1424_v27  ;;  %v1507_v22 = vadd.f32 %v1737_v1, %v1495_v23  ;;  %v1426_v48 = vadd.f32 %v1425_v16, %v1343_v51 }
 0x383   :  { %v1497_v49 = vadd.f32 %v1496_v45, %v1338_v32  ;;  %v1500_v57 = vpop.f32.mrf.mxu1 }
 0x384   :  { %1522 = vst [vmem:[#allocation9 + $0x8] sm:$0xff] %v1514_v50  ;;  %v1517_v7 = vmax.f32 %v1509_v5, 0.0  ;;  %v1515_v37 = vmax.f32 %v1507_v22, 0.0  ;;  %v1510_v43 = vadd.f32 %v1738_v38, %v1426_v48  ;;  %v1501_v35 = vadd.f32 %v1500_v57, %v1343_v51 }
 0x385   :  { %v1508_v59 = vadd.f32 %v1739_v14, %v1497_v49  ;;  %v1502_v13 = vpop.f32.mrf.mxu1 }
 0x386   :  { %1525 = vst [vmem:[#allocation9 + $0x20] sm:$0xff] %v1517_v7  ;;  %1523 = vst [vmem:[#allocation9 + $0x10] sm:$0xff] %v1515_v37  ;;  %v1518_v46 = vmax.f32 %v1510_v43, 0.0  ;;  %v1511_v12 = vadd.f32 %v1740_v17, %v1501_v35  ;;  %v1503_v2 = vadd.f32 %v1502_v13, %v1343_v51 }
 0x387   :  { %v1516_v30 = vmax.f32 %v1508_v59, 0.0 }
 0x388   :  { %1526 = vst [vmem:[#allocation9 + $0x28] sm:$0xff] %v1518_v46  ;;  %v1519_v10 = vmax.f32 %v1511_v12, 0.0  ;;  %v1512_v41 = vadd.f32 %v1741_v53, %v1503_v2 }
 0x389   :  { %1524 = vst [vmem:[#allocation9 + $0x18] sm:$0xff] %v1516_v30 }
 0x38a   :  { %1527 = vst [vmem:[#allocation9 + $0x30] sm:$0xff] %v1519_v10  ;;  %v1520_v55 = vmax.f32 %v1512_v41, 0.0 }
 0x38c   :  { %1528 = vst [vmem:[#allocation9 + $0x38] sm:$0xff] %v1520_v55 }
 0x38d   :  { %1813 = shalt.err (!%p1810_p5)
}
 0x38e   :  { %1540 = dma.vmem_to_hbm [thread:$0]  %s1535_s12, 1024, %s2448_s8, [#allocation5], %s1832_s15, %s1832_s15, %s1833_s16  }
 0x38f   :  { %1826 = dma.done.wait [#allocation5], 1024  }
 0x390   :  { %1827 = vsyncadd [#allocation5], 4294966272 }
 0x391   :  { %1544 = vsyncpa [#allocation4], 1 }
 0x392   :  { %1545 = vsyncpa [#allocation7], 1 }
 0x393   :  { %1546 = vsyncpa [#allocation5], 1 }

</bundles_post_ra>
